<compile_context>
chip_gen: v7x
topology: tpu7x:2x2x1
jax: 0.10.0
libtpu: 0.0.40
codegen_flags: <defaults>
</compile_context>

<pallas_src>
import functools

import jax
import jax.numpy as jnp
from jax.experimental import pallas as pl
from jax.experimental.pallas import tpu as pltpu


def _round_up(x: int, m: int) -> int:
    return ((x + m - 1) // m) * m


def _choose_tokens_per_step(n_tok: int, cap: int, row_align: int) -> int:
    """Tokens per grid step: multiple of row_align, <= cap, balanced steps."""
    cap = max(row_align, (cap // row_align) * row_align)
    # Aim for >= 2 grid steps whenever there is enough work so the two
    # TensorCores on v7x can each take a share of the token range (no-op on
    # single-TC v5e / v6e).  Balancing steps also keeps tail waste <= ~8 rows.
    target_steps = max(2, pl.cdiv(n_tok, cap)) if n_tok > row_align else 1
    t = _round_up(pl.cdiv(n_tok, target_steps), row_align)
    return max(row_align, min(t, cap))


def _emb_gather_kernel(idx_ref, table_ref, out_ref, sem, *,
                       tokens_per_step, aggregate_wait):
    """Gather `tokens_per_step` embedding rows straight from HBM into out_ref.

    idx_ref   : SMEM (num_steps * T,) int32  scalar-prefetched token ids
    table_ref : HBM  (V, D)                  raw embedding table (no auto-DMA)
    out_ref   : VMEM (T, D)                  output block for this grid step
    sem       : single DMA semaphore shared by all row copies of this step
    """
    step = pl.program_id(0)
    base = step * tokens_per_step

    # Issue all T gather DMAs first so T random HBM reads are in flight at
    # once.  Each copy is one (1, D) row landing directly in the output block.
    copies = []
    for r in range(tokens_per_step):
        tok = idx_ref[base + r]
        cp = pltpu.make_async_copy(
            table_ref.at[pl.ds(tok, 1), :],
            out_ref.at[pl.ds(r, 1), :],
            sem,
        )
        cp.start()
        copies.append(cp)

    if aggregate_wait:
        # DMA semaphores count bytes: the T (1, D) copies above add up to
        # exactly one (T, D) block, so a single wait retires all of them and
        # drops T-1 per-row waits of scalar/descriptor work per step.
        pltpu.make_async_copy(
            table_ref.at[pl.ds(0, tokens_per_step), :],
            out_ref,
            sem,
        ).wait()
    else:
        # Fallback: retire each row copy individually (identical sizes, same
        # semaphore -> equivalent semantics, just more per-step scalar work).
        for cp in copies:
            cp.wait()


def embedding_lookup(idx, table, *, max_tokens_per_step=256,
                     aggregate_wait=True):
    """idx: (B, S) int32, table: (V, D) -> (B, S, D) in table.dtype."""
    B, S = idx.shape
    V, D = table.shape
    n_tok = B * S

    # Sublane-dense row granule: 8 rows for f32, 16 for bf16, 32 for int8.
    itemsize = jnp.dtype(table.dtype).itemsize
    row_align = 8 * max(1, 4 // itemsize)

    tokens_per_step = _choose_tokens_per_step(
        n_tok, max_tokens_per_step, row_align)
    num_steps = pl.cdiv(n_tok, tokens_per_step)
    n_idx_pad = num_steps * tokens_per_step

    # Clamp token ids (avoid DMA bounds faults on bad ids) and pad the *index*
    # vector only (4 bytes/token) so every unrolled gather reads a valid id.
    # The output itself is NOT padded, so there is no post-kernel slice/copy.
    flat_idx = jnp.clip(idx.reshape(n_tok).astype(jnp.int32), 0, V - 1)
    if n_idx_pad != n_tok:
        flat_idx = jnp.pad(flat_idx, (0, n_idx_pad - n_tok))

    kernel = functools.partial(
        _emb_gather_kernel,
        tokens_per_step=tokens_per_step,
        aggregate_wait=aggregate_wait,
    )

    grid_spec = pltpu.PrefetchScalarGridSpec(
        num_scalar_prefetch=1,
        grid=(num_steps,),
        in_specs=[
            # Table stays in HBM; rows are gathered with manual DMA.
            pl.BlockSpec(memory_space=pl.ANY),
        ],
        out_specs=pl.BlockSpec(
            (tokens_per_step, D), lambda i, idx_ref: (i, 0)
        ),
        scratch_shapes=[pltpu.SemaphoreType.DMA(())],
    )

    out_flat = pl.pallas_call(
        kernel,
        out_shape=jax.ShapeDtypeStruct((n_tok, D), table.dtype),
        grid_spec=grid_spec,
        compiler_params=pltpu.CompilerParams(
            # Independent output blocks per step -> shardable across the two
            # TensorCores on v7x; no-op on single-TC chips.
            # TODO(synk): if plain "parallel" does not shard the 1-D grid
            # across v7x's two TCs, switch to a leading size-2 core-parallel
            # axis and split the token range explicitly.
            dimension_semantics=("parallel",),
        ),
    )(flat_idx, table)

    # (B*S, D) -> (B, S, D): trivial reshape, no data movement.
    return out_flat.reshape(B, S, D)


if __name__ == "__main__":
    # Small shapes consistent with the module (true module is V=32000, D=4096;
    # scaled down here to keep the synthetic example small).
    VOCAB = 1024
    DIM = 512
    BATCH = 2
    SEQ = 8

    key = jax.random.PRNGKey(0)
    k_tab, k_idx, k_idx2, k_idx3 = jax.random.split(key, 4)

    # Deterministic parameter init (matches nn.Embedding's N(0,1) default).
    table = jax.random.normal(k_tab, (VOCAB, DIM), dtype=jnp.float32)

    # Case 1: tiny prompt -> two small grid steps (v7x-style split), exact fit.
    x = jax.random.randint(k_idx, (BATCH, SEQ), 0, VOCAB, dtype=jnp.int32)
    out = jax.block_until_ready(embedding_lookup(x, table))
    ref = table[x]
    assert out.shape == (BATCH, SEQ, DIM)
    assert out.dtype == jnp.float32
    assert jnp.array_equal(out, ref)

    # Case 1b: per-row-wait fallback path.
    out_fb = jax.block_until_ready(
        embedding_lookup(x, table, aggregate_wait=False))
    assert jnp.array_equal(out_fb, ref)

    # Case 2: longer sequence -> multiple grid steps, no padding needed.
    SEQ2 = 40
    x2 = jax.random.randint(k_idx2, (BATCH, SEQ2), 0, VOCAB, dtype=jnp.int32)
    out2 = jax.block_until_ready(embedding_lookup(x2, table))
    ref2 = table[x2]
    assert out2.shape == (BATCH, SEQ2, DIM)
    assert jnp.array_equal(out2, ref2)

    # Case 3: odd token count -> padded index tail + clipped last output block.
    SEQ3 = 13
    x3 = jax.random.randint(k_idx3, (BATCH, SEQ3), 0, VOCAB, dtype=jnp.int32)
    out3 = jax.block_until_ready(embedding_lookup(x3, table))
    ref3 = table[x3]
    assert out3.shape == (BATCH, SEQ3, DIM)
    assert jnp.array_equal(out3, ref3)

    print("KERNEL_OK")
</pallas_src>

<mosaic_0001>
module attributes {stable_mosaic.version = 11 : i64} {
  func.func @_emb_gather_kernel(%arg0: i32, %arg1: memref<16xi32, #tpu.memory_space<smem>>, %arg2: memref<1024x512xf32, #tpu.memory_space<any>>, %arg3: memref<8x512xf32, #tpu.memory_space<vmem>>, %arg4: memref<!tpu.dma_semaphore, #tpu.memory_space<semaphore_mem>>) attributes {dimension_semantics = [#tpu.dimension_semantics<parallel>], iteration_bounds = array<i64: 2>, scalar_prefetch = 1 : i64, scratch_operands = 1 : i64, tpu.core_type = #tpu.core_type<tc>, window_params = [{}, {transform_indices = @transform_1, window_bounds = array<i64: 8, 512>}]} {
    %c8_i32 = arith.constant 8 : i32
    %0 = arith.muli %arg0, %c8_i32 : i32
    %c0_i32 = arith.constant 0 : i32
    %1 = arith.addi %0, %c0_i32 : i32
    %2 = arith.index_cast %1 : i32 to index
    %3 = memref.load %arg1[%2] : memref<16xi32, #tpu.memory_space<smem>>
    %c0_i32_0 = arith.constant 0 : i32
    %4 = tpu.memref_slice %arg2[%3, %c0_i32_0] : memref<1024x512xf32, #tpu.memory_space<any>> -> memref<1x512xf32, #tpu.memory_space<any>>
    %c0_i32_1 = arith.constant 0 : i32
    %c0_i32_2 = arith.constant 0 : i32
    %5 = tpu.memref_slice %arg3[%c0_i32_1, %c0_i32_2] : memref<8x512xf32, #tpu.memory_space<vmem>> -> memref<1x512xf32, #tpu.memory_space<vmem>>
    tpu.enqueue_dma source(%4 : memref<1x512xf32, #tpu.memory_space<any>>) target(%5 : memref<1x512xf32, #tpu.memory_space<vmem>>) target_semaphore(%arg4 : memref<!tpu.dma_semaphore, #tpu.memory_space<semaphore_mem>>)
    %c1_i32 = arith.constant 1 : i32
    %6 = arith.addi %0, %c1_i32 : i32
    %7 = arith.index_cast %6 : i32 to index
    %8 = memref.load %arg1[%7] : memref<16xi32, #tpu.memory_space<smem>>
    %c0_i32_3 = arith.constant 0 : i32
    %9 = tpu.memref_slice %arg2[%8, %c0_i32_3] : memref<1024x512xf32, #tpu.memory_space<any>> -> memref<1x512xf32, #tpu.memory_space<any>>
    %c1_i32_4 = arith.constant 1 : i32
    %c0_i32_5 = arith.constant 0 : i32
    %10 = tpu.memref_slice %arg3[%c1_i32_4, %c0_i32_5] : memref<8x512xf32, #tpu.memory_space<vmem>> -> memref<1x512xf32, #tpu.memory_space<vmem>>
    tpu.enqueue_dma source(%9 : memref<1x512xf32, #tpu.memory_space<any>>) target(%10 : memref<1x512xf32, #tpu.memory_space<vmem>>) target_semaphore(%arg4 : memref<!tpu.dma_semaphore, #tpu.memory_space<semaphore_mem>>)
    %c2_i32 = arith.constant 2 : i32
    %11 = arith.addi %0, %c2_i32 : i32
    %12 = arith.index_cast %11 : i32 to index
    %13 = memref.load %arg1[%12] : memref<16xi32, #tpu.memory_space<smem>>
    %c0_i32_6 = arith.constant 0 : i32
    %14 = tpu.memref_slice %arg2[%13, %c0_i32_6] : memref<1024x512xf32, #tpu.memory_space<any>> -> memref<1x512xf32, #tpu.memory_space<any>>
    %c2_i32_7 = arith.constant 2 : i32
    %c0_i32_8 = arith.constant 0 : i32
    %15 = tpu.memref_slice %arg3[%c2_i32_7, %c0_i32_8] : memref<8x512xf32, #tpu.memory_space<vmem>> -> memref<1x512xf32, #tpu.memory_space<vmem>>
    tpu.enqueue_dma source(%14 : memref<1x512xf32, #tpu.memory_space<any>>) target(%15 : memref<1x512xf32, #tpu.memory_space<vmem>>) target_semaphore(%arg4 : memref<!tpu.dma_semaphore, #tpu.memory_space<semaphore_mem>>)
    %c3_i32 = arith.constant 3 : i32
    %16 = arith.addi %0, %c3_i32 : i32
    %17 = arith.index_cast %16 : i32 to index
    %18 = memref.load %arg1[%17] : memref<16xi32, #tpu.memory_space<smem>>
    %c0_i32_9 = arith.constant 0 : i32
    %19 = tpu.memref_slice %arg2[%18, %c0_i32_9] : memref<1024x512xf32, #tpu.memory_space<any>> -> memref<1x512xf32, #tpu.memory_space<any>>
    %c3_i32_10 = arith.constant 3 : i32
    %c0_i32_11 = arith.constant 0 : i32
    %20 = tpu.memref_slice %arg3[%c3_i32_10, %c0_i32_11] : memref<8x512xf32, #tpu.memory_space<vmem>> -> memref<1x512xf32, #tpu.memory_space<vmem>>
    tpu.enqueue_dma source(%19 : memref<1x512xf32, #tpu.memory_space<any>>) target(%20 : memref<1x512xf32, #tpu.memory_space<vmem>>) target_semaphore(%arg4 : memref<!tpu.dma_semaphore, #tpu.memory_space<semaphore_mem>>)
    %c4_i32 = arith.constant 4 : i32
    %21 = arith.addi %0, %c4_i32 : i32
    %22 = arith.index_cast %21 : i32 to index
    %23 = memref.load %arg1[%22] : memref<16xi32, #tpu.memory_space<smem>>
    %c0_i32_12 = arith.constant 0 : i32
    %24 = tpu.memref_slice %arg2[%23, %c0_i32_12] : memref<1024x512xf32, #tpu.memory_space<any>> -> memref<1x512xf32, #tpu.memory_space<any>>
    %c4_i32_13 = arith.constant 4 : i32
    %c0_i32_14 = arith.constant 0 : i32
    %25 = tpu.memref_slice %arg3[%c4_i32_13, %c0_i32_14] : memref<8x512xf32, #tpu.memory_space<vmem>> -> memref<1x512xf32, #tpu.memory_space<vmem>>
    tpu.enqueue_dma source(%24 : memref<1x512xf32, #tpu.memory_space<any>>) target(%25 : memref<1x512xf32, #tpu.memory_space<vmem>>) target_semaphore(%arg4 : memref<!tpu.dma_semaphore, #tpu.memory_space<semaphore_mem>>)
    %c5_i32 = arith.constant 5 : i32
    %26 = arith.addi %0, %c5_i32 : i32
    %27 = arith.index_cast %26 : i32 to index
    %28 = memref.load %arg1[%27] : memref<16xi32, #tpu.memory_space<smem>>
    %c0_i32_15 = arith.constant 0 : i32
    %29 = tpu.memref_slice %arg2[%28, %c0_i32_15] : memref<1024x512xf32, #tpu.memory_space<any>> -> memref<1x512xf32, #tpu.memory_space<any>>
    %c5_i32_16 = arith.constant 5 : i32
    %c0_i32_17 = arith.constant 0 : i32
    %30 = tpu.memref_slice %arg3[%c5_i32_16, %c0_i32_17] : memref<8x512xf32, #tpu.memory_space<vmem>> -> memref<1x512xf32, #tpu.memory_space<vmem>>
    tpu.enqueue_dma source(%29 : memref<1x512xf32, #tpu.memory_space<any>>) target(%30 : memref<1x512xf32, #tpu.memory_space<vmem>>) target_semaphore(%arg4 : memref<!tpu.dma_semaphore, #tpu.memory_space<semaphore_mem>>)
    %c6_i32 = arith.constant 6 : i32
    %31 = arith.addi %0, %c6_i32 : i32
    %32 = arith.index_cast %31 : i32 to index
    %33 = memref.load %arg1[%32] : memref<16xi32, #tpu.memory_space<smem>>
    %c0_i32_18 = arith.constant 0 : i32
    %34 = tpu.memref_slice %arg2[%33, %c0_i32_18] : memref<1024x512xf32, #tpu.memory_space<any>> -> memref<1x512xf32, #tpu.memory_space<any>>
    %c6_i32_19 = arith.constant 6 : i32
    %c0_i32_20 = arith.constant 0 : i32
    %35 = tpu.memref_slice %arg3[%c6_i32_19, %c0_i32_20] : memref<8x512xf32, #tpu.memory_space<vmem>> -> memref<1x512xf32, #tpu.memory_space<vmem>>
    tpu.enqueue_dma source(%34 : memref<1x512xf32, #tpu.memory_space<any>>) target(%35 : memref<1x512xf32, #tpu.memory_space<vmem>>) target_semaphore(%arg4 : memref<!tpu.dma_semaphore, #tpu.memory_space<semaphore_mem>>)
    %c7_i32 = arith.constant 7 : i32
    %36 = arith.addi %0, %c7_i32 : i32
    %37 = arith.index_cast %36 : i32 to index
    %38 = memref.load %arg1[%37] : memref<16xi32, #tpu.memory_space<smem>>
    %c0_i32_21 = arith.constant 0 : i32
    %39 = tpu.memref_slice %arg2[%38, %c0_i32_21] : memref<1024x512xf32, #tpu.memory_space<any>> -> memref<1x512xf32, #tpu.memory_space<any>>
    %c7_i32_22 = arith.constant 7 : i32
    %c0_i32_23 = arith.constant 0 : i32
    %40 = tpu.memref_slice %arg3[%c7_i32_22, %c0_i32_23] : memref<8x512xf32, #tpu.memory_space<vmem>> -> memref<1x512xf32, #tpu.memory_space<vmem>>
    tpu.enqueue_dma source(%39 : memref<1x512xf32, #tpu.memory_space<any>>) target(%40 : memref<1x512xf32, #tpu.memory_space<vmem>>) target_semaphore(%arg4 : memref<!tpu.dma_semaphore, #tpu.memory_space<semaphore_mem>>)
    %c0_i32_24 = arith.constant 0 : i32
    %c0_i32_25 = arith.constant 0 : i32
    %41 = tpu.memref_slice %arg2[%c0_i32_24, %c0_i32_25] : memref<1024x512xf32, #tpu.memory_space<any>> -> memref<8x512xf32, #tpu.memory_space<any>>
    tpu.wait_dma2 semaphore(%arg4 : memref<!tpu.dma_semaphore, #tpu.memory_space<semaphore_mem>>) src(%41 : memref<8x512xf32, #tpu.memory_space<any>>) dst(%arg3 : memref<8x512xf32, #tpu.memory_space<vmem>>)
    return
  }
  func.func @transform_1(%arg0: i32, %arg1: memref<16xi32, #tpu.memory_space<smem>>) -> (i32, i32) {
    %c0_i32 = arith.constant 0 : i32
    %c0_i32_0 = arith.constant 0 : i32
    return %arg0, %c0_i32 : i32, i32
  }
}

</mosaic_0001>

<bundles_post_ra>
// kernel: tpu_custom_call.1
= control target key start
LH: loop header
LB: loop body
LE: loop exit
PB: predicated region body
PF: predicated region fallthrough
CT: control target
= control target key end

     0   :  { %s1075_s0 = inlined_call_operand.hbm [shape: s32[16], index: 0, kind: input, shape index: {}]   ;;  %s1076_s1 = inlined_call_operand.hbm [shape: f32[1024,512], index: 1, kind: input, shape index: {}]   ;;  %s1077_s2 = inlined_call_operand.hbm [shape: f32[16,512], index: 2, kind: output, shape index: {}]  }
   0x1   :  { %1094 = sst [smem:[#allocation32_spill]] %s1077_s2  ;;  %s355_s11 = scalar_lea.hbm %s1075_s0, 16 }
   0x2   :  { %p356_p0 = scmp.ne.s32.totalorder %s1075_s0, %s355_s11  ;;  %p359_p1 = scmp.lt.u32.totalorder %s355_s11, %s1075_s0 }
   0x4   :  { %p361_p2 = pnand %p359_p1, %p356_p0 }
   0x6   :  { %364 = shalt.err (!%p361_p2)  }
   0x7   :  { %s653_s16 = smov [#allocation4]  }
   0x8   :  { %8 = dma.hbm_to_smem %s1075_s0, 16, %s653_s16, [#allocation3] }
   0x9   :  { %631 = dma.done.wait [#allocation3], 16 }
   0xa   :  { %632 = vsyncadd [#allocation3], 4294967280 }
   0xb   :  { %10 = sfence }
   0xc   :  { %11 = vsyncpa [#allocation6], 0 }
   0xd   :  { %13 = vsyncpa [#allocation6 + $0x1], 0  ;;  %s684_s19 = smov 0   ;;  %s686_s20 = smov 0  }
   0xe   :  { %s688_s21 = smov 0  }
   0xf LB: > { %1095 = sst [smem:[#allocation26_spill]] %s643_s19  ;;  %s263_s0 = sadd.s32 4294967295, %s651_s21   ;;  %s651_s21 = sphi %s688_s21, %s1118_s21   ;;  %s647_s20 = sphi %s686_s20, %s1119_s20   ;;  %s643_s19 = sphi %s684_s19, %s1107_s19  }
  0x10   : > { %1096 = sst [smem:[#allocation27_spill]] %s647_s20  ;;  %s701_s22 = sadd.s32 1, %s651_s21  }
  0x11   : > { %1097 = sst [smem:[#allocation28_spill]] %s701_s22  ;;  %s22_s23 = ssub.s32 %s651_s21, %s701_s22 }
  0x12   : > { %s25_s24 = sadd.s32 1, %s647_s20  ;;  %p23_p3 = scmp.eq.s32.totalorder %s22_s23, 0 }
  0x13   : > { %p264_p4 = scmp.ne.s32.totalorder %s22_s23, 0  ;;  %p29_p5 = scmp.eq.s32.totalorder %s651_s21, 1 }
  0x14   : > { %p34_p6 = scmp.ne.s32.totalorder %s647_s20, %s643_s19  ;;  %p35_p8 = scmp.eq.s32.totalorder %s263_s0, 1 }
  0x15   : > { %s710_s25 = scalar_select %p23_p3, %s647_s20, %s25_s24  }
  0x16   : > { %p712_p7 = por %p264_p4, %p29_p5  ;;  %p326_p9 = scmp.lt.s32.totalorder %s651_s21, 2 }
  0x17   : > { %1098 = sst [smem:[#allocation29_spill]] %s710_s25  ;;  %p717_p10 = por %p35_p8, %p34_p6 }
  0x18   : > { %s1099_s26 = scalar_select %p712_p7, 1, 0 }
  0x19   : > { %s1100_s27 = scalar_select %p717_p10, 1, 0 }
  0x1a   : > { %s1078_s28 = sand.u32 1, %s647_s20   ;;  %s725_s30 = sshll.u32 %s651_s21, 3 }
  0x1b   : > { %1101 = sst [smem:[#allocation30_spill]] %s1100_s27  ;;  %s266_s29 = sshll.u32 %s1078_s28, 5 }
  0x1c   : > { %s294_s3 = scalar_select %p326_p9, [#allocation4], [#allocation15] }
  0x1d   : > { %s295_s4 = scalar_select %p326_p9, %s725_s30, 0 }
  0x1e   : > { %s732_s5 = scalar_lea.vmem [#allocation5], %s266_s29  ;;  %s65_s8 = sadd.s32 1, %s725_s30 }
  0x1f   : > { %s61_s6 = sshll.u32 %s732_s5, 4  ;;  %s53_s7 = sld [smem:[%s294_s3 + %s295_s4]]  ;;  %s741_s6 = int_to_ptr.vmem [resolvable:$true] %s61_s6 }
  0x20   : > { %s73_s9 = scalar_lea.vmem %s732_s5, 1 [#allocation5]  ;;  %s1121_s8 = smov (!%p326_p9, %s65_s8), 0 }
  0x21   : > { %s297_s10 = scalar_select %p326_p9, [#allocation4], [#allocation16] }
  0x22   : > { %1102 = sst [smem:[#allocation31_spill]] %s741_s6  ;;  %s75_s11 = sshll.u32 %s73_s9, 4  ;;  %s747_s11 = int_to_ptr.vmem [resolvable:$true] %s75_s11 }
  0x23   : > { %s743_s12 = sld [smem:[%s297_s10 + %s1121_s8]]  ;;  %s87_s17 = scalar_lea.vmem %s732_s5, 2 [#allocation5] }
  0x24   : > { %s89_s0 = sshll.u32 %s87_s17, 4  ;;  %s763_s9 = scalar_lea.hbm %s1076_s1, 65536  ;;  %s754_s0 = int_to_ptr.vmem [resolvable:$true] %s89_s0 }
  0x25   : > { %s54_s14 = sshrl.u32 %s53_s7, 3  ;;  %s55_s15 = sand.u32 7, %s53_s7  }
  0x26   : > { %s268_s16 = sshll.u32 %s54_s14, 5 }
  0x27   : > { %s57_s18 = sadd.s32 %s268_s16, %s55_s15 }
  0x28   : > { %s269_s23 = sshll.u32 %s57_s18, 4 }
  0x29   : > { %s752_s3 = scalar_lea.hbm %s1076_s1, %s269_s23 }
  0x2a   : > { %s365_s4 = scalar_lea.hbm %s752_s3, 64  ;;  %p370_p0 = scmp.lt.u32.totalorder %s752_s3, %s1076_s1 }
  0x2b   : > { %p366_p11 = scmp.ne.s32.totalorder %s752_s3, %s365_s4  ;;  %p371_p1 = scmp.lt.u32.totalorder %s763_s9, %s365_s4 }
  0x2c   : > { %p373_p3 = scmp.lt.u32.totalorder %s365_s4, %s752_s3 }
  0x2d   : > { %p367_p12 = pnand %p366_p11, %p326_p9  ;;  %p372_p2 = por %p371_p1, %p370_p0 }
  0x2f   : > { %p368_p13 = pneg %p367_p12  ;;  %p374_p4 = por %p373_p3, %p372_p2 }
  0x31   : > { %p375_p5 = pnand %p374_p4, %p368_p13 }
  0x33   : > { %378 = shalt.err (!%p375_p5)  }
  0x34   : > { %s379_s15 = scalar_lea.vmem %s741_s6, 64  ;;  %s654_s16 = smov [#allocation5]  }
  0x35   : > { %p380_p6 = scmp.ne.s32.totalorder %s741_s6, %s379_s15  ;;  %s383_s17 = sshll.u32 %s654_s16, 4  ;;  %s775_s17 = int_to_ptr.vmem [resolvable:$false] %s383_s17 }
  0x36   : > { %s778_s18 = scalar_lea.vmem %s775_s17, 1024  ;;  %p1084_p12 = scmp.lt.s32.totalorder %s741_s6, %s775_s17 }
  0x37   : > { %p381_p8 = pnand %p380_p6, %p326_p9  ;;  %p387_p13 = scmp.lt.s32.totalorder %s778_s18, %s379_s15 }
  0x39   : > { %p382_p11 = pneg %p381_p8  ;;  %p388_p0 = por %p387_p13, %p1084_p12 }
  0x3b   : > { %p389_p1 = pnand %p388_p0, %p382_p11 }
  0x3d   : > { %392 = shalt.err (!%p389_p1)  }
  0x3e   : > { %s1082_s23 = smov 128   ;;  %s1085_s24 = smov 1  }
  0x3f   : > { %296 = dma.hbm_to_vmem [thread:$0]  (%p326_p9), %s752_s3, 64, %s741_s6, [#allocation2], %s1082_s23, %s1082_s23, %s1085_s24 }
  0x40   : > { %s67_s29 = sshrl.u32 %s743_s12, 3  ;;  %s68_s4 = sand.u32 7, %s743_s12  }
  0x41   : > { %s270_s7 = sshll.u32 %s67_s29, 5  ;;  %s101_s8 = scalar_lea.vmem %s732_s5, 3 [#allocation5] }
  0x42   : > { %s70_s10 = sadd.s32 %s270_s7, %s68_s4  ;;  %s93_s14 = sadd.s32 3, %s725_s30 }
  0x43   : > { %s271_s15 = sshll.u32 %s70_s10, 4  ;;  %s797_s16 = sshll.u32 %s101_s8, 4  ;;  %s844_s16 = int_to_ptr.vmem [resolvable:$true] %s797_s16 }
  0x44   : > { %s72_s25 = scalar_lea.hbm %s1076_s1, %s271_s15  ;;  %s107_s22 = sadd.s32 4, %s725_s30 }
  0x45   : > { %s393_s27 = scalar_lea.hbm %s72_s25, 64  ;;  %p398_p5 = scmp.lt.u32.totalorder %s72_s25, %s1076_s1 }
  0x46   : > { %p394_p2 = scmp.ne.s32.totalorder %s72_s25, %s393_s27  ;;  %p399_p6 = scmp.lt.u32.totalorder %s763_s9, %s393_s27 }
  0x47   : > { %p401_p11 = scmp.lt.u32.totalorder %s393_s27, %s72_s25 }
  0x48   : > { %p395_p3 = pnand %p394_p2, %p326_p9  ;;  %p400_p8 = por %p399_p6, %p398_p5 }
  0x4a   : > { %p396_p4 = pneg %p395_p3  ;;  %p402_p13 = por %p401_p11, %p400_p8 }
  0x4c   : > { %p403_p0 = pnand %p402_p13, %p396_p4 }
  0x4e   : > { %406 = shalt.err (!%p403_p0)  }
  0x4f   : > { %s407_s28 = scalar_lea.vmem %s747_s11, 64  ;;  %p414_p12 = scmp.lt.s32.totalorder %s747_s11, %s775_s17 }
  0x50   : > { %p408_p1 = scmp.ne.s32.totalorder %s747_s11, %s407_s28  ;;  %p415_p10 = scmp.lt.s32.totalorder %s778_s18, %s407_s28 }
  0x52   : > { %p409_p2 = pnand %p408_p1, %p326_p9  ;;  %p416_p7 = por %p415_p10, %p414_p12 }
  0x54   : > { %p410_p3 = pneg %p409_p2 }
  0x56   : > { %p417_p5 = pnand %p416_p7, %p410_p3 }
  0x58   : > { %420 = shalt.err (!%p417_p5)  }
  0x59   : > { %s1103_s27 = smov 128   ;;  %s1104_s13 = sadd.s32 2, %s725_s30 }
  0x5a   : > { %299 = dma.hbm_to_vmem [thread:$0]  (%p326_p9), %s72_s25, 64, %s747_s11, [#allocation2], %s1103_s27, %s1103_s27, %s1085_s24 }
  0x5b   : > { %s300_s12 = scalar_select %p326_p9, [#allocation4], [#allocation17] }
  0x5c   : > { %s1123_s13 = smov (!%p326_p9, %s1104_s13), 0  ;;  %s115_s4 = scalar_lea.vmem %s732_s5, 4 [#allocation5] }
  0x5d   : > { %s303_s23 = scalar_select %p326_p9, [#allocation4], [#allocation18] }
  0x5e   : > { %s80_s29 = sld [smem:[%s300_s12 + %s1123_s13]]  ;;  %s1125_s14 = smov (!%p326_p9, %s93_s14), 0 }
  0x5f   : > { %s306_s7 = scalar_select %p326_p9, [#allocation4], [#allocation19] }
  0x60   : > { %s837_s8 = sld [smem:[%s303_s23 + %s1125_s14]]  ;;  %s117_s25 = sshll.u32 %s115_s4, 4  ;;  %s846_s25 = int_to_ptr.vmem [resolvable:$true] %s117_s25 }
  0x61   : > { %s1127_s22 = smov (!%p326_p9, %s107_s22), 0  ;;  %s121_s14 = sadd.s32 5, %s725_s30 }
  0x62   : > { %s848_s3 = sld [smem:[%s306_s7 + %s1127_s22]] }
  0x64   : > { %s81_s11 = sshrl.u32 %s80_s29, 3  ;;  %s82_s10 = sand.u32 7, %s80_s29  }
  0x65   : > { %s272_s15 = sshll.u32 %s81_s11, 5 }
  0x66   : > { %s84_s28 = sadd.s32 %s272_s15, %s82_s10  ;;  %s95_s13 = sshrl.u32 %s837_s8, 3 }
  0x67   : > { %s273_s12 = sshll.u32 %s84_s28, 4  ;;  %s96_s2 = sand.u32 7, %s837_s8  }
  0x68   : > { %s86_s24 = scalar_lea.hbm %s1076_s1, %s273_s12 }
  0x69   : > { %s421_s6 = scalar_lea.hbm %s86_s24, 64  ;;  %p426_p4 = scmp.lt.u32.totalorder %s86_s24, %s1076_s1 }
  0x6a   : > { %p422_p7 = scmp.ne.s32.totalorder %s86_s24, %s421_s6  ;;  %p427_p6 = scmp.lt.u32.totalorder %s763_s9, %s421_s6 }
  0x6b   : > { %p429_p11 = scmp.lt.u32.totalorder %s421_s6, %s86_s24 }
  0x6c   : > { %p423_p10 = pnand %p422_p7, %p326_p9  ;;  %p428_p8 = por %p427_p6, %p426_p4 }
  0x6e   : > { %p424_p12 = pneg %p423_p10  ;;  %p430_p13 = por %p429_p11, %p428_p8 }
  0x70   : > { %p431_p0 = pnand %p430_p13, %p424_p12 }
  0x72   : > { %434 = shalt.err (!%p431_p0)  }
  0x73   : > { %s435_s22 = scalar_lea.vmem %s754_s0, 64  ;;  %p442_p5 = scmp.lt.s32.totalorder %s754_s0, %s775_s17 }
  0x74   : > { %p436_p1 = scmp.ne.s32.totalorder %s754_s0, %s435_s22  ;;  %p443_p7 = scmp.lt.s32.totalorder %s778_s18, %s435_s22 }
  0x76   : > { %p437_p2 = pnand %p436_p1, %p326_p9  ;;  %p444_p10 = por %p443_p7, %p442_p5 }
  0x78   : > { %p438_p3 = pneg %p437_p2 }
  0x7a   : > { %p445_p4 = pnand %p444_p10, %p438_p3 }
  0x7c   : > { %448 = shalt.err (!%p445_p4)  }
  0x7d   : > { %s1105_s19 = smov 1   ;;  %s274_s20 = sshll.u32 %s95_s13, 5 }
  0x7e   : > { %302 = dma.hbm_to_vmem [thread:$0]  (%p326_p9), %s86_s24, 64, %s754_s0, [#allocation2], %s1103_s27, %s1103_s27, %s1105_s19 }
  0x7f   : > { %s129_s6 = scalar_lea.vmem %s732_s5, 5 [#allocation5]  ;;  %s98_s29 = sadd.s32 %s274_s20, %s96_s2 }
  0x80   : > { %s109_s7 = sshrl.u32 %s848_s3, 3  ;;  %s275_s8 = sshll.u32 %s98_s29, 4 }
  0x81   : > { %s110_s11 = sand.u32 7, %s848_s3   ;;  %s100_s28 = scalar_lea.hbm %s1076_s1, %s275_s8 }
  0x82   : > { %s276_s12 = sshll.u32 %s109_s7, 5  ;;  %s449_s23 = scalar_lea.hbm %s100_s28, 64 }
  0x83   : > { %p450_p12 = scmp.ne.s32.totalorder %s100_s28, %s449_s23  ;;  %p454_p11 = scmp.lt.u32.totalorder %s100_s28, %s1076_s1 }
  0x84   : > { %p455_p13 = scmp.lt.u32.totalorder %s763_s9, %s449_s23  ;;  %p457_p1 = scmp.lt.u32.totalorder %s449_s23, %s100_s28 }
  0x85   : > { %p451_p6 = pnand %p450_p12, %p326_p9 }
  0x86   : > { %p456_p0 = por %p455_p13, %p454_p11 }
  0x87   : > { %p452_p8 = pneg %p451_p6 }
  0x88   : > { %p458_p2 = por %p457_p1, %p456_p0 }
  0x8a   : > { %p459_p3 = pnand %p458_p2, %p452_p8 }
  0x8c   : > { %462 = shalt.err (!%p459_p3)  }
  0x8d   : > { %s463_s2 = scalar_lea.vmem %s844_s16, 64  ;;  %p470_p4 = scmp.lt.s32.totalorder %s844_s16, %s775_s17 }
  0x8e   : > { %p464_p5 = scmp.ne.s32.totalorder %s844_s16, %s463_s2  ;;  %p471_p12 = scmp.lt.s32.totalorder %s778_s18, %s463_s2 }
  0x90   : > { %p465_p7 = pnand %p464_p5, %p326_p9  ;;  %p472_p6 = por %p471_p12, %p470_p4 }
  0x92   : > { %p466_p10 = pneg %p465_p7 }
  0x94   : > { %p473_p11 = pnand %p472_p6, %p466_p10 }
  0x96   : > { %476 = shalt.err (!%p473_p11)  }
  0x97   : > { %305 = dma.hbm_to_vmem [thread:$0]  (%p326_p9), %s100_s28, 64, %s844_s16, [#allocation2], %s1103_s27, %s1103_s27, %s1105_s19 }
  0x98   : > { %s112_s0 = sadd.s32 %s276_s12, %s110_s11  ;;  %s902_s24 = sshll.u32 %s129_s6, 4  ;;  %s939_s24 = int_to_ptr.vmem [resolvable:$true] %s902_s24 }
  0x99   : > { %s277_s3 = sshll.u32 %s112_s0, 4  ;;  %s135_s13 = sadd.s32 6, %s725_s30 }
  0x9a   : > { %s114_s7 = scalar_lea.hbm %s1076_s1, %s277_s3  ;;  %s143_s8 = scalar_lea.vmem %s732_s5, 6 [#allocation5] }
  0x9b   : > { %s477_s10 = scalar_lea.hbm %s114_s7, 64  ;;  %p482_p1 = scmp.lt.u32.totalorder %s114_s7, %s1076_s1 }
  0x9c   : > { %p478_p8 = scmp.ne.s32.totalorder %s114_s7, %s477_s10  ;;  %p483_p2 = scmp.lt.u32.totalorder %s763_s9, %s477_s10 }
  0x9d   : > { %p485_p5 = scmp.lt.u32.totalorder %s477_s10, %s114_s7 }
  0x9e   : > { %p479_p13 = pnand %p478_p8, %p326_p9  ;;  %p484_p3 = por %p483_p2, %p482_p1 }
  0xa0   : > { %p480_p0 = pneg %p479_p13  ;;  %p486_p7 = por %p485_p5, %p484_p3 }
  0xa2   : > { %p487_p10 = pnand %p486_p7, %p480_p0 }
  0xa4   : > { %490 = shalt.err (!%p487_p10)  }
  0xa5   : > { %s491_s16 = scalar_lea.vmem %s846_s25, 64  ;;  %p498_p11 = scmp.lt.s32.totalorder %s846_s25, %s775_s17 }
  0xa6   : > { %p492_p4 = scmp.ne.s32.totalorder %s846_s25, %s491_s16  ;;  %p499_p8 = scmp.lt.s32.totalorder %s778_s18, %s491_s16 }
  0xa8   : > { %p493_p12 = pnand %p492_p4, %p326_p9  ;;  %p500_p13 = por %p499_p8, %p498_p11 }
  0xaa   : > { %p494_p6 = pneg %p493_p12 }
  0xac   : > { %p501_p1 = pnand %p500_p13, %p494_p6 }
  0xae   : > { %504 = shalt.err (!%p501_p1)  }
  0xaf   : > { %308 = dma.hbm_to_vmem [thread:$0]  (%p326_p9), %s114_s7, 64, %s846_s25, [#allocation2], %s1103_s27, %s1103_s27, %s1105_s19 }
  0xb0   : > { %s309_s6 = scalar_select %p326_p9, [#allocation4], [#allocation20] }
  0xb1   : > { %s1129_s14 = smov (!%p326_p9, %s121_s14), 0  ;;  %s145_s12 = sshll.u32 %s143_s8, 4  ;;  %s944_s12 = int_to_ptr.vmem [resolvable:$true] %s145_s12 }
  0xb2   : > { %s312_s11 = scalar_select %p326_p9, [#allocation4], [#allocation21] }
  0xb3   : > { %s122_s28 = sld [smem:[%s309_s6 + %s1129_s14]]  ;;  %s1131_s13 = smov (!%p326_p9, %s135_s13), 0 }
  0xb4   : > { %s149_s4 = sadd.s32 7, %s725_s30  ;;  %s942_s22 = sld [smem:[%s312_s11 + %s1131_s13]] }
  0xb5   : > { %s315_s25 = scalar_select %p326_p9, [#allocation4], [#allocation22] }
  0xb6   : > { %s1133_s4 = smov (!%p326_p9, %s149_s4), 0  ;;  %s157_s29 = scalar_lea.vmem %s732_s5, 7 [#allocation5] }
  0xb7   : > { %s950_s3 = sld [smem:[%s315_s25 + %s1133_s4]] }
  0xb9   : > { %s123_s2 = sshrl.u32 %s122_s28, 3  ;;  %s124_s14 = sand.u32 7, %s122_s28  }
  0xba   : > { %s278_s0 = sshll.u32 %s123_s2, 5  ;;  %s137_s13 = sshrl.u32 %s942_s22, 3 }
  0xbb   : > { %s126_s20 = sadd.s32 %s278_s0, %s124_s14  ;;  %s138_s15 = sand.u32 7, %s942_s22  }
  0xbc   : > { %s279_s30 = sshll.u32 %s126_s20, 4 }
  0xbd   : > { %s128_s10 = scalar_lea.hbm %s1076_s1, %s279_s30 }
  0xbe   : > { %s505_s23 = scalar_lea.hbm %s128_s10, 64  ;;  %p510_p5 = scmp.lt.u32.totalorder %s128_s10, %s1076_s1 }
  0xbf   : > { %p506_p0 = scmp.ne.s32.totalorder %s128_s10, %s505_s23  ;;  %p511_p7 = scmp.lt.u32.totalorder %s763_s9, %s505_s23 }
  0xc0   : > { %p513_p4 = scmp.lt.u32.totalorder %s505_s23, %s128_s10 }
  0xc1   : > { %p507_p2 = pnand %p506_p0, %p326_p9  ;;  %p512_p10 = por %p511_p7, %p510_p5 }
  0xc3   : > { %p508_p3 = pneg %p507_p2  ;;  %p514_p12 = por %p513_p4, %p512_p10 }
  0xc5   : > { %p515_p6 = pnand %p514_p12, %p508_p3 }
  0xc7   : > { %518 = shalt.err (!%p515_p6)  }
  0xc8   : > { %s519_s11 = scalar_lea.vmem %s939_s24, 64  ;;  %p526_p1 = scmp.lt.s32.totalorder %s939_s24, %s775_s17 }
  0xc9   : > { %p520_p11 = scmp.ne.s32.totalorder %s939_s24, %s519_s11  ;;  %p527_p0 = scmp.lt.s32.totalorder %s778_s18, %s519_s11 }
  0xcb   : > { %p521_p8 = pnand %p520_p11, %p326_p9  ;;  %p528_p2 = por %p527_p0, %p526_p1 }
  0xcd   : > { %p522_p13 = pneg %p521_p8 }
  0xcf   : > { %p529_p5 = pnand %p528_p2, %p522_p13 }
  0xd1   : > { %532 = shalt.err (!%p529_p5)  }
  0xd2   : > { %311 = dma.hbm_to_vmem [thread:$0]  (%p326_p9), %s128_s10, 64, %s939_s24, [#allocation2], %s1103_s27, %s1103_s27, %s1105_s19 }
  0xd3   : > { %s280_s28 = sshll.u32 %s137_s13, 5  ;;  %s979_s4 = sshll.u32 %s157_s29, 4  ;;  %s160_s4 = int_to_ptr.vmem [resolvable:$true] %s979_s4 }
  0xd4   : > { %s140_s22 = sadd.s32 %s280_s28, %s138_s15  ;;  %s151_s25 = sshrl.u32 %s950_s3, 3 }
  0xd5   : > { %s281_s2 = sshll.u32 %s140_s22, 4  ;;  %s152_s14 = sand.u32 7, %s950_s3  }
  0xd6   : > { %s142_s30 = scalar_lea.hbm %s1076_s1, %s281_s2  ;;  %s282_s7 = sshll.u32 %s151_s25, 5 }
  0xd7   : > { %s533_s8 = scalar_lea.hbm %s142_s30, 64  ;;  %p538_p4 = scmp.lt.u32.totalorder %s142_s30, %s1076_s1 }
  0xd8   : > { %p534_p3 = scmp.ne.s32.totalorder %s142_s30, %s533_s8  ;;  %p539_p12 = scmp.lt.u32.totalorder %s763_s9, %s533_s8 }
  0xd9   : > { %p541_p11 = scmp.lt.u32.totalorder %s533_s8, %s142_s30 }
  0xda   : > { %p535_p7 = pnand %p534_p3, %p326_p9  ;;  %p540_p6 = por %p539_p12, %p538_p4 }
  0xdc   : > { %p536_p10 = pneg %p535_p7  ;;  %p542_p8 = por %p541_p11, %p540_p6 }
  0xde   : > { %p543_p13 = pnand %p542_p8, %p536_p10 }
  0xe0   : > { %546 = shalt.err (!%p543_p13)  }
  0xe1   : > { %s547_s5 = scalar_lea.vmem %s944_s12, 64  ;;  %p554_p5 = scmp.lt.s32.totalorder %s944_s12, %s775_s17 }
  0xe2   : > { %p548_p1 = scmp.ne.s32.totalorder %s944_s12, %s547_s5  ;;  %p555_p3 = scmp.lt.s32.totalorder %s778_s18, %s547_s5 }
  0xe4   : > { %p549_p0 = pnand %p548_p1, %p326_p9  ;;  %p556_p7 = por %p555_p3, %p554_p5 }
  0xe6   : > { %p550_p2 = pneg %p549_p0 }
  0xe8   : > { %p557_p4 = pnand %p556_p7, %p550_p2 }
  0xea   : > { %560 = shalt.err (!%p557_p4)  }
  0xeb   : > { %314 = dma.hbm_to_vmem [thread:$0]  (%p326_p9), %s142_s30, 64, %s944_s12, [#allocation2], %s1103_s27, %s1103_s27, %s1105_s19 }
  0xec   : > { %s154_s3 = sadd.s32 %s282_s7, %s152_s14 }
  0xed   : > { %s283_s29 = sshll.u32 %s154_s3, 4 }
  0xee   : > { %s156_s15 = scalar_lea.hbm %s1076_s1, %s283_s29 }
  0xef   : > { %s561_s16 = scalar_lea.hbm %s156_s15, 64  ;;  %p566_p11 = scmp.lt.u32.totalorder %s156_s15, %s1076_s1 }
  0xf0   : > { %p562_p10 = scmp.ne.s32.totalorder %s156_s15, %s561_s16  ;;  %p567_p8 = scmp.lt.u32.totalorder %s763_s9, %s561_s16 }
  0xf1   : > { %p569_p1 = scmp.lt.u32.totalorder %s561_s16, %s156_s15 }
  0xf2   : > { %p563_p12 = pnand %p562_p10, %p326_p9  ;;  %p568_p13 = por %p567_p8, %p566_p11 }
  0xf4   : > { %p564_p6 = pneg %p563_p12  ;;  %p570_p0 = por %p569_p1, %p568_p13 }
  0xf6   : > { %p571_p2 = pnand %p570_p0, %p564_p6 }
  0xf8   : > { %574 = shalt.err (!%p571_p2)  }
  0xf9   : > { %s575_s12 = scalar_lea.vmem %s160_s4, 64  ;;  %p582_p4 = scmp.lt.s32.totalorder %s160_s4, %s775_s17 }
  0xfa   : > { %p576_p5 = scmp.ne.s32.totalorder %s160_s4, %s575_s12  ;;  %p583_p10 = scmp.lt.s32.totalorder %s778_s18, %s575_s12 }
  0xfc   : > { %p577_p3 = pnand %p576_p5, %p326_p9  ;;  %p584_p12 = por %p583_p10, %p582_p4 }
  0xfe   : > { %p578_p7 = pneg %p577_p3 }
 0x100   : > { %p585_p8 = pnand %p584_p12, %p578_p7 }
 0x102   : > { %588 = shalt.err (!%p585_p8)  }
 0x103   : > { %317 = dma.hbm_to_vmem [thread:$0]  (%p326_p9), %s156_s15, 64, %s160_s4, [#allocation2], %s1103_s27, %s1103_s27, %s1105_s19 }
 0x104   : > { %634 = dma.done.wait (%p326_p9), [#allocation2], 512 }
 0x105   : > { %636 = vsyncadd (%p326_p9), [#allocation2], 4294966784  ;;  %s1106_s9 = sld [smem:[#allocation26_spill]]  ;;  %s1107_s19 = sld [smem:[#allocation27_spill]] }
 0x106   : > { %s1108_s28 = sld [smem:[#allocation31_spill]]  ;;  %s290_s22 = sshll.u32 %s651_s21, 9 }
 0x107   : > { %s1109_s27 = sld [smem:[#allocation32_spill]]  ;;  %p1110_p6 = scmp.ne.s32.totalorder %s1099_s26, 0 }
 0x109   : > { %p1036_p11 = pnand %p326_p9, %p1110_p6 }
 0x10b   : > { %s1111_s14 = scalar_select %p1036_p11, 1, 0 }
 0x10c   : > { %s194_s0 = sand.u32 1, %s1106_s9   ;;  %s1112_s20 = sand.u32 1, %s1107_s19  }
 0x10d   : > { %s180_s4 = scalar_lea.hbm %s1109_s27, %s290_s22  ;;  %s168_s30 = scalar_lea.sflag [#allocation6], %s1112_s20 }
 0x10e   : > { %s589_s7 = scalar_lea.vmem %s1108_s28, 512  ;;  %p591_p0 = pneg %p1036_p11 }
 0x10f   : > { %p590_p1 = scmp.ne.s32.totalorder %s1108_s28, %s589_s7  ;;  %p598_p3 = scmp.lt.s32.totalorder %s778_s18, %s589_s7 }
 0x110   : > { %p1113_p7 = scmp.lt.s32.totalorder %s1108_s28, %s775_s17 }
 0x111   : > { %p592_p2 = pnand %p591_p0, %p590_p1 }
 0x112   : > { %p599_p4 = por %p598_p3, %p1113_p7 }
 0x113   : > { %p593_p5 = pneg %p592_p2 }
 0x115   : > { %p600_p10 = pnand %p599_p4, %p593_p5 }
 0x117   : > { %603 = shalt.err (!%p600_p10)
}
 0x118   : > { %s604_s26 = scalar_lea.hbm %s180_s4, 512  ;;  %s609_s24 = scalar_lea.hbm %s1109_s27, 1024 }
 0x119   : > { %p605_p9 = scmp.ne.s32.totalorder %s180_s4, %s604_s26  ;;  %p610_p6 = scmp.lt.u32.totalorder %s180_s4, %s1109_s27 }
 0x11a   : > { %p611_p13 = scmp.lt.u32.totalorder %s609_s24, %s604_s26  ;;  %p613_p2 = scmp.lt.u32.totalorder %s604_s26, %s180_s4 }
 0x11b   : > { %p607_p12 = pnand %p605_p9, %p591_p0 }
 0x11c   : > { %p612_p1 = por %p611_p13, %p610_p6 }
 0x11d   : > { %p608_p8 = pneg %p607_p12 }
 0x11e   : > { %p614_p11 = por %p613_p2, %p612_p1 }
 0x120   : > { %p615_p3 = pnand %p614_p11, %p608_p8 }
 0x122   : > { %618 = shalt.err (!%p615_p3)
}
 0x123   : > { %p1114_p5 = scmp.ne.s32.totalorder %s1111_s14, 0  ;;  %s1115_s17 = sld [smem:[#allocation30_spill]] }
 0x124   : > { %p1117_p7 = scmp.ge.s32.totalorder %s651_s21, 1  ;;  %s195_s18 = scalar_lea.sflag [#allocation6], %s194_s0 }
 0x125   : > { %321 = dma.vmem_to_hbm [thread:$0]  (!%p1114_p5), %s1108_s28, 512, %s180_s4, %s168_s30  }
 0x129   : > { %p1116_p0 = scmp.ne.s32.totalorder %s1115_s17, 0 }
 0x12b   : > { %p323_p4 = pnand %p1117_p7, %p1116_p0 }
 0x12d   : > { %638 = dma.done.wait (!%p323_p4), %s195_s18, 512  }
 0x12e   : > { %640 = vsyncadd (!%p323_p4), %s195_s18, 4294966784  ;;  %s1118_s21 = sld [smem:[#allocation28_spill]]  ;;  %s1119_s20 = sld [smem:[#allocation29_spill]] }
 0x134   : > { %p16_p13 = scmp.ge.s32.totalorder %s1118_s21, 3  }
 0x136   :  { %18 = sbr.rel (!%p16_p13) target bundleno = 15 (0xf), region = 59 }
 0x13d   :  { %200 = vsyncpa [#allocation6], 1 }
 0x13e   :  { %202 = vsyncpa [#allocation6 + $0x1], 1 }
 0x13f   :  { %203 = vsyncmov [#allocation2] }
 0x142   :  { %s204_s29 = vpop.sfrf %203 }
 0x143   :  { %p289_p11 = scmp.ne.s32.totalorder %s204_s29, 0 }
 0x145   :  { %208 = shalt.err (%p289_p11)  }

</bundles_post_ra>
